<compile_context>
chip_gen: v5e
topology: v5e:2x2
jax: 0.10.0
libtpu: 0.0.40
codegen_flags: <defaults>
</compile_context>

<pallas_src>
import functools

import jax
import jax.numpy as jnp
from jax.experimental import pallas as pl
from jax.experimental.pallas import tpu as pltpu


def _round_up(a, b):
    return -(-a // b) * b


def _num_pieces(dtype) -> int:
    """Number of disjoint bf16 mantissa pieces needed to carry `dtype` exactly."""
    dtype = jnp.dtype(dtype)
    if dtype == jnp.bfloat16:
        return 1                      # native single pass
    if dtype.itemsize == 1:
        return 1                      # (u)int8 / fp8: <= 8 significant bits
    if dtype.itemsize == 2:
        return 2                      # f16 / (u)int16: <= 16 significant bits
    return 3                          # f32 / int32(<2^24): <= 24 significant bits


def _split_exact_bf16(x_f32, npieces):
    """Split f32 into `npieces` bf16 parts whose f32 sum reconstructs x exactly.

    Truncation-based split (bitcast + mask of the low 16 bits), so every part is
    bf16-representable and parts occupy disjoint mantissa bit ranges -> the
    left-to-right f32 recombination is exact for normal finite values.
    """
    mask = jnp.uint32(0xFFFF0000)
    parts = []
    rem = x_f32
    for _ in range(npieces - 1):
        hi = pltpu.bitcast(pltpu.bitcast(rem, jnp.uint32) & mask, jnp.float32)
        parts.append(hi.astype(jnp.bfloat16))
        rem = rem - hi
    parts.append(rem.astype(jnp.bfloat16))
    return parts


def _pixel_unshuffle_kernel(x_ref, sel_ref, o_ref, *, r, Wi, Wo, TN, Ct, Hot,
                            npieces, native_bf16):
    """One (batch, channel-tile, row-tile) block per grid step.

    x_ref   : (Ct*Hot, r*Wi)        rows=(c, oh), lanes=(dy, ow*r + dx)
    sel_ref : (r, TN*r, TN) bf16    per-dx chunk-local one-hot selectors
    o_ref   : (Ct, r, r, Hot, Wo)   dims=(c, dy, dx, oh, ow)
    """
    # Hoist the tiny resident selectors out of the loops.
    sels = [sel_ref[dx] for dx in range(r)]                 # each (TN*r, TN)

    # Output lane chunks of width TN.  A ragged tail is handled with an
    # overlapping, right-aligned last chunk (idempotent re-write).
    starts = list(range(0, (Wo // TN) * TN, TN))
    if Wo % TN:
        starts.append(Wo - TN)

    for dy in range(r):
        for ow0 in starts:
            w0 = dy * Wi + ow0 * r
            xin = x_ref[:, w0:w0 + TN * r]                  # (Ct*Hot, TN*r)
            if native_bf16:
                parts = [xin]
            else:
                parts = _split_exact_bf16(xin.astype(jnp.float32), npieces)
            for dx in range(r):
                s = sels[dx]
                acc = jnp.dot(parts[0], s, preferred_element_type=jnp.float32)
                for p in parts[1:]:
                    acc = acc + jnp.dot(p, s, preferred_element_type=jnp.float32)
                o_ref[:, dy, dx, :, ow0:ow0 + TN] = (
                    acc.reshape(Ct, Hot, TN).astype(o_ref.dtype))


def _pick_tiles(C, Ho, Wo, r, itemsize, budget_bytes):
    """Choose (channel_tile, row_tile) so double-buffered in+out blocks fit the
    VMEM budget (sized for v7x) and respect the (8,128) BlockSpec rule.  Prefers
    tiling channels with full Ho rows; falls back to tiling Ho for small-C,
    huge-plane inputs."""
    Wi = Wo * r

    def block_bytes(ct, hot):
        in_b = ct * hot * r * Wi * itemsize
        # Output block (ct, r, r, hot, Wo): last two dims padded to the hardware
        # tile; (16, 128) is conservative for 16-bit dtypes.
        out_b = ct * r * r * _round_up(hot, 16) * _round_up(Wo, 128) * itemsize
        return 2 * (in_b + out_b)                 # x2: Pallas double-buffers

    def legal(ct, hot):
        rows = ct * hot                           # input block second-minor dim
        in_ok = (rows == C * Ho) or (rows % 8 == 0)
        out_ok = (hot == Ho) or (hot % 8 == 0)
        return in_ok and out_ok

    def divisors_desc(n):
        return [d for d in range(n, 0, -1) if n % d == 0]

    for ct in divisors_desc(C):                   # prefer: tile channels only
        if legal(ct, Ho) and block_bytes(ct, Ho) <= budget_bytes:
            return ct, Ho, block_bytes(ct, Ho)
    for hot in divisors_desc(Ho):                 # small C / huge plane: tile Ho
        if legal(1, hot) and block_bytes(1, hot) <= budget_bytes:
            return 1, hot, block_bytes(1, hot)
    cands = ([(ct, Ho) for ct in divisors_desc(C) if legal(ct, Ho)] +
             [(1, hot) for hot in divisors_desc(Ho) if legal(1, hot)])
    ct, hot = min(cands, key=lambda c: block_bytes(*c))   # best effort, correct
    return ct, hot, block_bytes(ct, hot)


def pixel_unshuffle(x, upscale_factor, *, block_vmem_budget_bytes=12 * 2**20):
    """x: (N, C, H, W) -> (N, C*r*r, H//r, W//r), PyTorch PixelUnShuffle order."""
    r = int(upscale_factor)
    N, C, H, W = x.shape
    if H % r or W % r:
        raise ValueError("spatial dims must be divisible by upscale_factor")
    if r == 1:
        return x
    Ho, Wo = H // r, W // r
    Wi = W                                        # input width = Wo * r
    dtype = jnp.dtype(x.dtype)

    npieces = _num_pieces(dtype)
    native_bf16 = dtype == jnp.bfloat16

    # 128-lane output chunks keep the one-hot contraction at r*128 regardless of
    # image width (constant MXU flops/element; K = r*TN >= 256 for r >= 2).  If
    # Wo < 128 a single lane-masked chunk is unavoidable (layout of the op).
    TN = min(Wo, 128)

    Ct, Hot, bb = _pick_tiles(C, Ho, Wo, r, dtype.itemsize,
                              block_vmem_budget_bytes)
    nC, nH = C // Ct, Ho // Hot

    # Free contiguous reshape only: rows=(c, oh), lanes=(dy, ow*r + dx).
    x3 = x.reshape(N, C * Ho, r * Wi)

    # Per-dx chunk-local one-hot selectors, bf16 (0/1 exact): (r, TN*r, TN).
    t = jnp.arange(TN)
    src = t[None, :] * r + jnp.arange(r)[:, None]               # (r, TN)
    sel = jnp.swapaxes(jax.nn.one_hot(src, TN * r, dtype=jnp.bfloat16), 1, 2)

    kernel = functools.partial(
        _pixel_unshuffle_kernel, r=r, Wi=Wi, Wo=Wo, TN=TN, Ct=Ct, Hot=Hot,
        npieces=npieces, native_bf16=native_bf16)

    # Advisory cost: bandwidth-bound permutation; the only flops are the small
    # chunked one-hot matmuls (contraction r*TN per piece).
    n_elems = N * C * H * W
    passes = 1 if native_bf16 else npieces
    cost = pl.CostEstimate(
        flops=2 * n_elems * (r * TN) * passes,
        transcendentals=0,
        bytes_accessed=2 * n_elems * dtype.itemsize,
    )

    sel_bytes = 2 * sel.size * 2
    vmem_limit = int(min(100 * 2**20, max(32 * 2**20, bb + sel_bytes + 12 * 2**20)))

    out6 = pl.pallas_call(
        kernel,
        out_shape=jax.ShapeDtypeStruct((N, C, r, r, Ho, Wo), dtype),
        grid=(N, nC, nH),
        in_specs=[
            pl.BlockSpec((None, Ct * Hot, r * Wi),
                         lambda n, ci, hi: (n, ci * nH + hi, 0)),
            pl.BlockSpec((r, TN * r, TN), lambda n, ci, hi: (0, 0, 0)),
        ],
        out_specs=pl.BlockSpec((None, Ct, r, r, Hot, Wo),
                               lambda n, ci, hi: (n, ci, 0, 0, hi, 0)),
        compiler_params=pltpu.CompilerParams(
            dimension_semantics=("parallel", "parallel", "parallel"),
            vmem_limit_bytes=vmem_limit,
        ),
        cost_estimate=cost,
    )(x3, sel)

    # Free contiguous reshape to PyTorch layout: channel = c*r*r + dy*r + dx.
    return out6.reshape(N, C * r * r, Ho, Wo)


def _reference(x, r):
    N, C, H, W = x.shape
    Ho, Wo = H // r, W // r
    return (x.reshape(N, C, Ho, r, Wo, r)
              .transpose(0, 1, 3, 5, 2, 4)
              .reshape(N, C * r * r, Ho, Wo))


if __name__ == "__main__":
    key = jax.random.PRNGKey(0)
    cases = [
        # (N, C, H,  W,  r, dtype)
        (2, 4, 16, 16, 2, jnp.float32),    # spec-sized smoke test (exact f32 path)
        (1, 8, 64, 64, 2, jnp.bfloat16),   # native single-pass bf16 path
        (1, 3, 32, 32, 4, jnp.float32),    # r=4, odd channel count, Wo < 128
    ]
    for i, (N, C, H, W, r, dt) in enumerate(cases):
        key, sub = jax.random.split(key)
        x = jax.random.normal(sub, (N, C, H, W), jnp.float32).astype(dt)
        out = jax.block_until_ready(pixel_unshuffle(x, r))
        ref = _reference(x, r)
        assert out.shape == ref.shape, (out.shape, ref.shape)
        assert bool(jnp.array_equal(out, ref)), f"mismatch vs reference in case {i}"

    print("KERNEL_OK")
</pallas_src>

<mosaic_0001>
module attributes {stable_mosaic.version = 11 : i64} {
  func.func @_pixel_unshuffle_kernel(%arg0: i32, %arg1: i32, %arg2: i32, %arg3: memref<1x32x32xf32, #tpu.memory_space<vmem>>, %arg4: memref<2x16x8xbf16, #tpu.memory_space<vmem>>, %arg5: memref<1x4x2x2x8x8xf32, #tpu.memory_space<vmem>>) attributes {dimension_semantics = [#tpu.dimension_semantics<parallel>, #tpu.dimension_semantics<parallel>, #tpu.dimension_semantics<parallel>], iteration_bounds = array<i64: 2, 1, 1>, scalar_prefetch = 0 : i64, scratch_operands = 0 : i64, tpu.core_type = #tpu.core_type<tc>, window_params = [{transform_indices = @transform_0, window_bounds = array<i64: 1, 32, 32>}, {pipeline_mode = #tpu.pipeline_mode<synchronous>, transform_indices = @transform_1, window_bounds = array<i64: 2, 16, 8>}, {transform_indices = @transform_2, window_bounds = array<i64: 1, 4, 2, 2, 8, 8>}]} {
    %c0 = arith.constant 0 : index
    %c0_0 = arith.constant 0 : index
    %c0_1 = arith.constant 0 : index
    %0 = vector.load %arg4[%c0, %c0_0, %c0_1] : memref<2x16x8xbf16, #tpu.memory_space<vmem>>, vector<1x16x8xbf16>
    %1 = vector.shape_cast %0 : vector<1x16x8xbf16> to vector<16x8xbf16>
    %c1 = arith.constant 1 : index
    %c0_2 = arith.constant 0 : index
    %c0_3 = arith.constant 0 : index
    %2 = vector.load %arg4[%c1, %c0_2, %c0_3] : memref<2x16x8xbf16, #tpu.memory_space<vmem>>, vector<1x16x8xbf16>
    %3 = vector.shape_cast %2 : vector<1x16x8xbf16> to vector<16x8xbf16>
    %c0_4 = arith.constant 0 : index
    %c0_5 = arith.constant 0 : index
    %c0_6 = arith.constant 0 : index
    %4 = vector.load %arg3[%c0_4, %c0_5, %c0_6] : memref<1x32x32xf32, #tpu.memory_space<vmem>>, vector<1x32x16xf32>
    %5 = vector.shape_cast %4 : vector<1x32x16xf32> to vector<32x16xf32>
    %6 = tpu.bitcast %5 : vector<32x16xf32> -> vector<32x16xi32>
    %c-65536_i32 = arith.constant -65536 : i32
    %7 = vector.broadcast %c-65536_i32 : i32 to vector<32x16xi32>
    %8 = arith.andi %6, %7 : vector<32x16xi32>
    %9 = tpu.bitcast %8 : vector<32x16xi32> -> vector<32x16xf32>
    %10 = arith.truncf %9 : vector<32x16xf32> to vector<32x16xbf16>
    %11 = arith.subf %5, %9 : vector<32x16xf32>
    %12 = tpu.bitcast %11 : vector<32x16xf32> -> vector<32x16xi32>
    %c-65536_i32_7 = arith.constant -65536 : i32
    %13 = vector.broadcast %c-65536_i32_7 : i32 to vector<32x16xi32>
    %14 = arith.andi %12, %13 : vector<32x16xi32>
    %15 = tpu.bitcast %14 : vector<32x16xi32> -> vector<32x16xf32>
    %16 = arith.truncf %15 : vector<32x16xf32> to vector<32x16xbf16>
    %17 = arith.subf %11, %15 : vector<32x16xf32>
    %18 = arith.truncf %17 : vector<32x16xf32> to vector<32x16xbf16>
    %cst = arith.constant dense<0.000000e+00> : vector<32x8xf32>
    %19 = tpu.matmul %10, %1, %cst {dimension_numbers = #tpu.dot_dimension_numbers<[1], [0], [0], [1], [0, 0, 1, 1], [], []>} : vector<32x16xbf16>, vector<16x8xbf16>, vector<32x8xf32> -> vector<32x8xf32>
    %cst_8 = arith.constant dense<0.000000e+00> : vector<32x8xf32>
    %20 = tpu.matmul %16, %1, %cst_8 {dimension_numbers = #tpu.dot_dimension_numbers<[1], [0], [0], [1], [0, 0, 1, 1], [], []>} : vector<32x16xbf16>, vector<16x8xbf16>, vector<32x8xf32> -> vector<32x8xf32>
    %21 = arith.addf %19, %20 : vector<32x8xf32>
    %cst_9 = arith.constant dense<0.000000e+00> : vector<32x8xf32>
    %22 = tpu.matmul %18, %1, %cst_9 {dimension_numbers = #tpu.dot_dimension_numbers<[1], [0], [0], [1], [0, 0, 1, 1], [], []>} : vector<32x16xbf16>, vector<16x8xbf16>, vector<32x8xf32> -> vector<32x8xf32>
    %23 = arith.addf %21, %22 : vector<32x8xf32>
    %24 = vector.shape_cast %23 : vector<32x8xf32> to vector<4x8x8xf32>
    %c0_10 = arith.constant 0 : index
    %c0_11 = arith.constant 0 : index
    %c0_12 = arith.constant 0 : index
    %c0_13 = arith.constant 0 : index
    %c0_14 = arith.constant 0 : index
    %c0_15 = arith.constant 0 : index
    %25 = vector.load %arg5[%c0_10, %c0_11, %c0_12, %c0_13, %c0_14, %c0_15] : memref<1x4x2x2x8x8xf32, #tpu.memory_space<vmem>>, vector<1x4x1x1x8x8xf32>
    %26 = vector.shape_cast %25 : vector<1x4x1x1x8x8xf32> to vector<4x8x8xf32>
    %27 = vector.shape_cast %24 : vector<4x8x8xf32> to vector<1x4x1x1x8x8xf32>
    tpu.vector_store %arg5[%c0_10, %c0_11, %c0_12, %c0_13, %c0_14, %c0_15], %27 {strides = array<i32>} : memref<1x4x2x2x8x8xf32, #tpu.memory_space<vmem>>, vector<1x4x1x1x8x8xf32>,
    %cst_16 = arith.constant dense<0.000000e+00> : vector<32x8xf32>
    %28 = tpu.matmul %10, %3, %cst_16 {dimension_numbers = #tpu.dot_dimension_numbers<[1], [0], [0], [1], [0, 0, 1, 1], [], []>} : vector<32x16xbf16>, vector<16x8xbf16>, vector<32x8xf32> -> vector<32x8xf32>
    %cst_17 = arith.constant dense<0.000000e+00> : vector<32x8xf32>
    %29 = tpu.matmul %16, %3, %cst_17 {dimension_numbers = #tpu.dot_dimension_numbers<[1], [0], [0], [1], [0, 0, 1, 1], [], []>} : vector<32x16xbf16>, vector<16x8xbf16>, vector<32x8xf32> -> vector<32x8xf32>
    %30 = arith.addf %28, %29 : vector<32x8xf32>
    %cst_18 = arith.constant dense<0.000000e+00> : vector<32x8xf32>
    %31 = tpu.matmul %18, %3, %cst_18 {dimension_numbers = #tpu.dot_dimension_numbers<[1], [0], [0], [1], [0, 0, 1, 1], [], []>} : vector<32x16xbf16>, vector<16x8xbf16>, vector<32x8xf32> -> vector<32x8xf32>
    %32 = arith.addf %30, %31 : vector<32x8xf32>
    %33 = vector.shape_cast %32 : vector<32x8xf32> to vector<4x8x8xf32>
    %c0_19 = arith.constant 0 : index
    %c0_20 = arith.constant 0 : index
    %c0_21 = arith.constant 0 : index
    %c1_22 = arith.constant 1 : index
    %c0_23 = arith.constant 0 : index
    %c0_24 = arith.constant 0 : index
    %34 = vector.load %arg5[%c0_19, %c0_20, %c0_21, %c1_22, %c0_23, %c0_24] : memref<1x4x2x2x8x8xf32, #tpu.memory_space<vmem>>, vector<1x4x1x1x8x8xf32>
    %35 = vector.shape_cast %34 : vector<1x4x1x1x8x8xf32> to vector<4x8x8xf32>
    %36 = vector.shape_cast %33 : vector<4x8x8xf32> to vector<1x4x1x1x8x8xf32>
    tpu.vector_store %arg5[%c0_19, %c0_20, %c0_21, %c1_22, %c0_23, %c0_24], %36 {strides = array<i32>} : memref<1x4x2x2x8x8xf32, #tpu.memory_space<vmem>>, vector<1x4x1x1x8x8xf32>,
    %c0_25 = arith.constant 0 : index
    %c0_26 = arith.constant 0 : index
    %c16 = arith.constant 16 : index
    %37 = vector.load %arg3[%c0_25, %c0_26, %c16] : memref<1x32x32xf32, #tpu.memory_space<vmem>>, vector<1x32x16xf32>
    %38 = vector.shape_cast %37 : vector<1x32x16xf32> to vector<32x16xf32>
    %39 = tpu.bitcast %38 : vector<32x16xf32> -> vector<32x16xi32>
    %c-65536_i32_27 = arith.constant -65536 : i32
    %40 = vector.broadcast %c-65536_i32_27 : i32 to vector<32x16xi32>
    %41 = arith.andi %39, %40 : vector<32x16xi32>
    %42 = tpu.bitcast %41 : vector<32x16xi32> -> vector<32x16xf32>
    %43 = arith.truncf %42 : vector<32x16xf32> to vector<32x16xbf16>
    %44 = arith.subf %38, %42 : vector<32x16xf32>
    %45 = tpu.bitcast %44 : vector<32x16xf32> -> vector<32x16xi32>
    %c-65536_i32_28 = arith.constant -65536 : i32
    %46 = vector.broadcast %c-65536_i32_28 : i32 to vector<32x16xi32>
    %47 = arith.andi %45, %46 : vector<32x16xi32>
    %48 = tpu.bitcast %47 : vector<32x16xi32> -> vector<32x16xf32>
    %49 = arith.truncf %48 : vector<32x16xf32> to vector<32x16xbf16>
    %50 = arith.subf %44, %48 : vector<32x16xf32>
    %51 = arith.truncf %50 : vector<32x16xf32> to vector<32x16xbf16>
    %cst_29 = arith.constant dense<0.000000e+00> : vector<32x8xf32>
    %52 = tpu.matmul %43, %1, %cst_29 {dimension_numbers = #tpu.dot_dimension_numbers<[1], [0], [0], [1], [0, 0, 1, 1], [], []>} : vector<32x16xbf16>, vector<16x8xbf16>, vector<32x8xf32> -> vector<32x8xf32>
    %cst_30 = arith.constant dense<0.000000e+00> : vector<32x8xf32>
    %53 = tpu.matmul %49, %1, %cst_30 {dimension_numbers = #tpu.dot_dimension_numbers<[1], [0], [0], [1], [0, 0, 1, 1], [], []>} : vector<32x16xbf16>, vector<16x8xbf16>, vector<32x8xf32> -> vector<32x8xf32>
    %54 = arith.addf %52, %53 : vector<32x8xf32>
    %cst_31 = arith.constant dense<0.000000e+00> : vector<32x8xf32>
    %55 = tpu.matmul %51, %1, %cst_31 {dimension_numbers = #tpu.dot_dimension_numbers<[1], [0], [0], [1], [0, 0, 1, 1], [], []>} : vector<32x16xbf16>, vector<16x8xbf16>, vector<32x8xf32> -> vector<32x8xf32>
    %56 = arith.addf %54, %55 : vector<32x8xf32>
    %57 = vector.shape_cast %56 : vector<32x8xf32> to vector<4x8x8xf32>
    %c0_32 = arith.constant 0 : index
    %c0_33 = arith.constant 0 : index
    %c1_34 = arith.constant 1 : index
    %c0_35 = arith.constant 0 : index
    %c0_36 = arith.constant 0 : index
    %c0_37 = arith.constant 0 : index
    %58 = vector.load %arg5[%c0_32, %c0_33, %c1_34, %c0_35, %c0_36, %c0_37] : memref<1x4x2x2x8x8xf32, #tpu.memory_space<vmem>>, vector<1x4x1x1x8x8xf32>
    %59 = vector.shape_cast %58 : vector<1x4x1x1x8x8xf32> to vector<4x8x8xf32>
    %60 = vector.shape_cast %57 : vector<4x8x8xf32> to vector<1x4x1x1x8x8xf32>
    tpu.vector_store %arg5[%c0_32, %c0_33, %c1_34, %c0_35, %c0_36, %c0_37], %60 {strides = array<i32>} : memref<1x4x2x2x8x8xf32, #tpu.memory_space<vmem>>, vector<1x4x1x1x8x8xf32>,
    %cst_38 = arith.constant dense<0.000000e+00> : vector<32x8xf32>
    %61 = tpu.matmul %43, %3, %cst_38 {dimension_numbers = #tpu.dot_dimension_numbers<[1], [0], [0], [1], [0, 0, 1, 1], [], []>} : vector<32x16xbf16>, vector<16x8xbf16>, vector<32x8xf32> -> vector<32x8xf32>
    %cst_39 = arith.constant dense<0.000000e+00> : vector<32x8xf32>
    %62 = tpu.matmul %49, %3, %cst_39 {dimension_numbers = #tpu.dot_dimension_numbers<[1], [0], [0], [1], [0, 0, 1, 1], [], []>} : vector<32x16xbf16>, vector<16x8xbf16>, vector<32x8xf32> -> vector<32x8xf32>
    %63 = arith.addf %61, %62 : vector<32x8xf32>
    %cst_40 = arith.constant dense<0.000000e+00> : vector<32x8xf32>
    %64 = tpu.matmul %51, %3, %cst_40 {dimension_numbers = #tpu.dot_dimension_numbers<[1], [0], [0], [1], [0, 0, 1, 1], [], []>} : vector<32x16xbf16>, vector<16x8xbf16>, vector<32x8xf32> -> vector<32x8xf32>
    %65 = arith.addf %63, %64 : vector<32x8xf32>
    %66 = vector.shape_cast %65 : vector<32x8xf32> to vector<4x8x8xf32>
    %c0_41 = arith.constant 0 : index
    %c0_42 = arith.constant 0 : index
    %c1_43 = arith.constant 1 : index
    %c1_44 = arith.constant 1 : index
    %c0_45 = arith.constant 0 : index
    %c0_46 = arith.constant 0 : index
    %67 = vector.load %arg5[%c0_41, %c0_42, %c1_43, %c1_44, %c0_45, %c0_46] : memref<1x4x2x2x8x8xf32, #tpu.memory_space<vmem>>, vector<1x4x1x1x8x8xf32>
    %68 = vector.shape_cast %67 : vector<1x4x1x1x8x8xf32> to vector<4x8x8xf32>
    %69 = vector.shape_cast %66 : vector<4x8x8xf32> to vector<1x4x1x1x8x8xf32>
    tpu.vector_store %arg5[%c0_41, %c0_42, %c1_43, %c1_44, %c0_45, %c0_46], %69 {strides = array<i32>} : memref<1x4x2x2x8x8xf32, #tpu.memory_space<vmem>>, vector<1x4x1x1x8x8xf32>,
    return
  }
  func.func @transform_0(%arg0: i32, %arg1: i32, %arg2: i32) -> (i32, i32, i32) {
    %c1_i32 = arith.constant 1 : i32
    %0 = arith.muli %arg1, %c1_i32 : i32
    %1 = arith.addi %0, %arg2 : i32
    %c0_i32 = arith.constant 0 : i32
    %c0_i32_0 = arith.constant 0 : i32
    return %arg0, %1, %c0_i32 : i32, i32, i32
  }
  func.func @transform_1(%arg0: i32, %arg1: i32, %arg2: i32) -> (i32, i32, i32) {
    %c0_i32 = arith.constant 0 : i32
    %c0_i32_0 = arith.constant 0 : i32
    %c0_i32_1 = arith.constant 0 : i32
    %c0_i32_2 = arith.constant 0 : i32
    return %c0_i32, %c0_i32_0, %c0_i32_1 : i32, i32, i32
  }
  func.func @transform_2(%arg0: i32, %arg1: i32, %arg2: i32) -> (i32, i32, i32, i32, i32, i32) {
    %c0_i32 = arith.constant 0 : i32
    %c0_i32_0 = arith.constant 0 : i32
    %c0_i32_1 = arith.constant 0 : i32
    %c0_i32_2 = arith.constant 0 : i32
    return %arg0, %arg1, %c0_i32, %c0_i32_0, %arg2, %c0_i32_1 : i32, i32, i32, i32, i32, i32
  }
}

</mosaic_0001>

<bundles_post_ra>
// kernel: tpu_custom_call.1
= control target key start
LH: loop header
LB: loop body
LE: loop exit
PB: predicated region body
PF: predicated region fallthrough
CT: control target
= control target key end

     0   :  { %7 = vsyncpa [#allocation3], 0  ;;  %s1182_s0 = inlined_call_operand.hbm [shape: f32[2,32,32], index: 0, kind: input, shape index: {}]   ;;  %s1183_s1 = inlined_call_operand.vmem [shape: bf16[2,16,8], index: 1, kind: input, shape index: {}]   ;;  %s1184_s2 = inlined_call_operand.hbm [shape: f32[2,4,2,2,8,8], index: 2, kind: output, shape index: {}]  }
   0x1   :  { %9 = vsyncpa [#allocation3 + $0x1], 0 }
   0x2   :  { %10 = vsyncpa [#allocation4], 0 }
   0x3   :  { %12 = vsyncpa [#allocation4 + $0x1], 0  ;;  %s996_s9 = smov 0   ;;  %s998_s10 = smov 0  }
   0x4   :  { %s1000_s11 = smov 0   ;;  %s1002_s12 = smov 0  }
   0x5   :  { %s1004_s13 = smov 0   ;;  %s1006_s14 = smov 0  }
   0x6 LB: > { %s730_s15 = sadd.s32 4294967295, %s974_s14   ;;  %s731_s16 = sadd.s32 4294967294, %s974_s14   ;;  %s974_s14 = sphi %s1006_s14, %s18_s14   ;;  %s970_s13 = sphi %s1004_s13, %s1193_s13   ;;  %s966_s12 = sphi %s1002_s12, %s1192_s12   ;;  %s962_s11 = sphi %s1000_s11, %s1191_s11   ;;  %s958_s10 = sphi %s998_s10, %s1190_s10   ;;  %s954_s9 = sphi %s996_s9, %s1189_s9  }
   0x7   : > { %s37_s17 = sadd.s32 1, %s970_s13  ;;  %s48_s18 = sadd.s32 1, %s962_s11 }
   0x8   : > { %p39_p0 = scmp.ge.s32.totalorder %s37_s17, 2  ;;  %p55_p1 = scmp.ne.s32.totalorder %s962_s11, %s958_s10 }
   0x9   : > { %p56_p2 = scmp.eq.s32.totalorder %s974_s14, 0  ;;  %p61_p3 = scmp.ne.s32.totalorder %s958_s10, %s954_s9 }
   0xa   : > { %s1195_s17 = smov (%p39_p0, %s37_s17), 0  ;;  %p62_p5 = scmp.eq.s32.totalorder %s730_s15, 0 }
   0xb   : > { %p1037_p4 = por %p56_p2, %p55_p1  ;;  %s43_s20 = ssub.s32 %s970_s13, %s1195_s17 }
   0xc   : > { %p110_p6 = scmp.eq.s32.totalorder %s730_s15, 1  ;;  %p46_p7 = scmp.eq.s32.totalorder %s43_s20, 0 }
   0xd   : > { %p1043_p8 = por %p62_p5, %p61_p3  ;;  %p116_p10 = scmp.eq.s32.totalorder %s731_s16, 1 }
   0xe   : > { %p1047_p9 = por %p110_p6, %p55_p1  ;;  %p733_p12 = scmp.ge.s32.totalorder %s974_s14, 2 }
   0xf   : > { %s1052_s23 = scalar_select %p46_p7, %s962_s11, %s48_s18  }
  0x10   : > { %p1054_p11 = por %p116_p10, %p61_p3  ;;  %p807_p13 = scmp.lt.s32.totalorder %s974_s14, 2 }
  0x11   : > { %s139_s25 = sand.u32 1, %s962_s11   ;;  %s791_s27 = sshll.u32 %s970_s13, 5 }
  0x12   : > { %s734_s26 = sshll.u32 %s139_s25, 5  ;;  %s151_s30 = scalar_lea.hbm %s1182_s0, %s791_s27 }
  0x13   : > { %s143_s3 = scalar_lea.vmem [#allocation2], %s734_s26  ;;  %s152_s5 = sshll.u32 %s151_s30, 4  ;;  %s153_s5 = int_to_ptr.hbm [resolvable:$true] %s152_s5 }
  0x14   : > { %s154_s4 = sshll.u32 %s143_s3, 4  ;;  %p800_p0 = pnand %p807_p13, %p1037_p4  ;;  %s155_s4 = int_to_ptr.vmem [resolvable:$true] %s154_s4 }
  0x15   : > { %p737_p1 = scmp.ge.s32.totalorder %s974_s14, 1  ;;  %s140_s6 = scalar_lea.sflag [#allocation3], %s139_s25 }
  0x16   : > { %s976_s7 = smov 128   ;;  %s977_s8 = smov 8  }
  0x17   : > { %802 = dma.hbm_to_vmem [thread:$0]  (!%p800_p0), %s153_s5, 512, %s155_s4, %s140_s6, %s976_s7, %s976_s7, %s977_s8  }
  0x18   : > { %p162_p2 = scmp.lt.s32.totalorder %s974_s14, 3 }
  0x1a   : > { %p163_p3 = pnand %p737_p1, %p162_p2 }
  0x1b   : > { %s1070_s15 = sand.u32 (!%p163_p3), 1, %s958_s10  }
  0x1c   : > { %166 = sbr.rel (%p163_p3) target bundleno = 360 (0x168), region = 28  ;;  %s738_s16 = sshll.u32 (!%p163_p3), %s1070_s15, 5 }
  0x1d   : > { %s169_s18 = scalar_lea.sflag (!%p163_p3), [#allocation3], %s1070_s15  ;;  %s172_s20 = scalar_lea.vmem (!%p163_p3), [#allocation2], %s738_s16 }
  0x21   : > { %945 = dma.done.wait (%p1043_p8), %s169_s18, 512  }
  0x22   : > { %947 = vsyncadd (%p1043_p8), %s169_s18, 4294966784  ;;  %v408_v0 = vld [vmem:[%s172_s20] sm:$0xff]  ;;  %v409_v1 = vld [vmem:[%s172_s20 + $0x8] sm:$0xff]  ;;  %vm251_vm0 = vcmask 130048   ;;  %s978_s21 = smov 112   ;;  %s739_s28 = sshll.u32 %s1070_s15, 7 }
  0x23   : > { %v410_v2 = vld [vmem:[%s172_s20 + $0x10] sm:$0xff]  ;;  %v416_v3 = vand.u32 4294901760, %v408_v0  ;;  %v417_v4 = vand.u32 4294901760, %v409_v1  ;;  %v411_v5 = vld [vmem:[%s172_s20 + $0x18] sm:$0xff]  ;;  %v792_v7 = vld [vmem:[%s1183_s1] sm:$0xff]  ;;  %vm331_vm1 = vcmask 64512  }
  0x24   : > { %v418_v6 = vand.u32 4294901760, %v410_v2  ;;  %v793_v8 = vld [vmem:[%s1183_s1 + $0x8] sm:$0xff]  ;;  %v419_v9 = vand.u32 4294901760, %v411_v5  ;;  %290 = vmatpush.bf16.msra.mxu1 %v792_v7  ;;  %265 = vmatpush.bf16.msra.mxu0 %v792_v7  ;;  %s1105_s29 = scalar_lea.vmem [#allocation5], %s739_s28  ;;  %s794_s30 = sshll.u32 %s966_s12, 7 }
  0x25   : > { %v426_v10 = vsub.f32 %v408_v0, %v416_v3  ;;  %v427_v11 = vsub.f32 %v409_v1, %v417_v4  ;;  %v424_v13 = vpack.c.bf16 %v417_v4, %v416_v3  ;;  %315 = vmatpush.bf16.msra.mxu2 %v792_v7  ;;  %349 = vmatpush.bf16.msra.mxu3 %v793_v8  ;;  %s634_s5 = scalar_lea.hbm %s1184_s2, %s794_s30  ;;  %s635_s6 = sshll.u32 %s1105_s29, 4  ;;  %s636_s6 = int_to_ptr.vmem [resolvable:$true] %s635_s6 }
  0x26   : > { %v428_v12 = vsub.f32 %v410_v2, %v418_v6  ;;  %v429_v14 = vsub.f32 %v411_v5, %v419_v9  ;;  %v425_v26 = vpack.c.bf16 %v419_v9, %v418_v6  ;;  %s637_s7 = sshll.u32 %s634_s5, 4  ;;  %s619_s12 = scalar_lea.sflag [#allocation4], %s1070_s15  ;;  %s638_s7 = int_to_ptr.hbm [resolvable:$true] %s637_s7 }
  0x27   : > { %v434_v15 = vand.u32 4294901760, %v426_v10  ;;  %v435_v16 = vand.u32 4294901760, %v427_v11  ;;  %748 = vmatmul.msk.bf16.vlgmr.msra.gmra.mxu1 %vm251_vm0, %v424_v13  ;;  %s906_s8 = sshra.s32 %s638_s7, 4  ;;  %s912_s19 = scalar_lea.hbm %s1184_s2, 256  ;;  %s907_s8 = int_to_ptr.hbm [resolvable:$true] %s906_s8 }
  0x28   : > { %v436_v17 = vand.u32 4294901760, %v428_v12  ;;  %387 = vmatpush.bf16.msrb.mxu1 %v793_v8  ;;  %v437_v18 = vand.u32 4294901760, %v429_v14  ;;  %368 = vmatpush.bf16.msrb.mxu0 %v793_v8  ;;  %s908_s16 = scalar_lea.hbm %s907_s8, 128  ;;  %p913_p7 = scmp.lt.s32.totalorder %s907_s8, %s1184_s2 }
  0x29   : > { %v442_v19 = vpack.c.bf16 %v435_v16, %v434_v15  ;;  %v444_v20 = vsub.f32 %v426_v10, %v434_v15  ;;  %v445_v21 = vsub.f32 %v427_v11, %v435_v16  ;;  %469 = vmatpush.bf16.msrb.mxu2 %v792_v7  ;;  %500 = vmatpush.bf16.msrb.mxu3 %v792_v7  ;;  %p909_p4 = scmp.ne.s32.totalorder %s907_s8, %s908_s16  ;;  %p914_p8 = scmp.lt.s32.totalorder %s912_s19, %s908_s16 }
  0x2a   : > { %v443_v22 = vpack.c.bf16 %v437_v18, %v436_v17  ;;  %v446_v24 = vsub.f32 %v428_v12, %v436_v17  ;;  %v447_v25 = vsub.f32 %v429_v14, %v437_v18 }
  0x2b   : > { %452 = vrot.lane.b32.xlu0 %v442_v19, %s978_s21  ;;  %v448_v23 = vpack.c.bf16 %v445_v21, %v444_v20  ;;  %746 = vmatmul.msk.bf16.vlgmr.msra.gmra.mxu0 %vm251_vm0, %v442_v19  ;;  %p910_p5 = pnand %p909_p4, %p1047_p9  ;;  %p915_p10 = por %p914_p8, %p913_p7 }
  0x2c   : > { %559 = vmatpush.bf16.msra.mxu1 %v793_v8  ;;  %454 = vrot.lane.b32.xlu1 %v443_v22, %s978_s21  ;;  %v449_v27 = vpack.c.bf16 %v447_v25, %v446_v24 }
  0x2d   : > { %756 = vmatmul.msk.bf16.vlgmr.msra.gmra.mxu3 %vm251_vm0, %v442_v19  ;;  %514 = vrot.lane.b32.xlu2 %v448_v23, %s978_s21  ;;  %p911_p6 = pneg %p910_p5 }
  0x2e   : > { %750 = vmatmul.msk.bf16.vlgmr.msra.gmra.mxu2 %vm251_vm0, %v448_v23  ;;  %597 = vmatpush.bf16.msra.mxu3 %v793_v8 }
  0x2f   : > { %578 = vmatpush.bf16.msra.mxu2 %v793_v8  ;;  %531 = vmatpush.bf16.msra.mxu0 %v792_v7  ;;  %p916_p13 = pnand %p915_p10, %p911_p6 }
  0x33   : > { %483 = vrot.lane.b32.xlu0 %v424_v13, %s978_s21 }
  0x34   : > { %485 = vrot.lane.b32.xlu1 %v425_v26, %s978_s21 }
  0x35   : > { %516 = vrot.lane.b32.xlu2 %v449_v27, %s978_s21 }
  0x37   : > { %749 = vmatmul.msk.bf16.gmra.mxu1 %vm251_vm0, %v425_v26 }
  0x3b   : > { %747 = vmatmul.msk.bf16.gmra.mxu0 %vm251_vm0, %v443_v22 }
  0x3d   : > { %757 = vmatmul.msk.bf16.gmra.mxu3 %vm251_vm0, %v443_v22 }
  0x3e   : > { %751 = vmatmul.msk.bf16.gmra.mxu2 %vm251_vm0, %v449_v27 }
  0x47   : > { %760 = vmatmul.msk.bf16.vlgmr.msrb.gmra.mxu1 %vm251_vm0, %v448_v23 }
  0x4b   : > { %758 = vmatmul.msk.bf16.vlgmr.msrb.gmra.mxu0 %vm251_vm0, %v424_v13 }
  0x57   : > { %761 = vmatmul.msk.bf16.gmra.mxu1 %vm251_vm0, %v449_v27 }
  0x5b   : > { %759 = vmatmul.msk.bf16.gmra.mxu0 %vm251_vm0, %v425_v26 }
  0x87   : > { %v515_v28 = vpop.permute.xlu2 %514 }
  0x88   : > { %770 = vmatmul.msk.bf16.vlgmr.msra.gmra.mxu0 %vm251_vm0, %v515_v28 }
  0x8f   : > { %v517_v29 = vpop.permute.xlu2 %516 }
  0x98   : > { %771 = vmatmul.msk.bf16.gmra.mxu0 %vm251_vm0, %v517_v29 }
  0x9d   : > { %v453_v30 = vpop.permute.xlu0 %452 }
  0x9e   : > { %766 = vmatmul.msk.bf16.vlgmr.msrb.gmra.mxu2 %vm251_vm0, %v453_v30  ;;  %776 = vmatmul.msk.bf16.vlgmr.msra.gmra.mxu1 %vm251_vm0, %v453_v30  ;;  %v455_v32 = vpop.permute.xlu1 %454 }
  0xa4   : > { %v292_v34 = vpop.f32.mrf.mxu1 }
  0xa5   : > { %v484_v31 = vpop.permute.xlu0 %483 }
  0xa6   : > { %768 = vmatmul.msk.bf16.vlgmr.msrb.gmra.mxu3 %vm251_vm0, %v484_v31  ;;  %v486_v33 = vpop.permute.xlu1 %485 }
  0xa8   : > { %v267_v35 = vpop.f32.mrf.mxu0 }
  0xa9   : > { %v293_v36 = vadd.f32 %v292_v34, %v267_v35 }
  0xac   : > { %v294_v39 = vpop.f32.mrf.mxu1 }
  0xae   : > { %767 = vmatmul.msk.bf16.gmra.mxu2 %vm251_vm0, %v455_v32  ;;  %777 = vmatmul.msk.bf16.gmra.mxu1 %vm251_vm0, %v455_v32 }
  0xb0   : > { %v269_v40 = vpop.f32.mrf.mxu0  ;;  %v351_v49 = vpop.f32.mrf.mxu3 }
  0xb1   : > { %v317_v37 = vpop.f32.mrf.mxu2  ;;  %v295_v41 = vadd.f32 %v294_v39, %v269_v40 }
  0xb2   : > { %v327_v38 = vadd.f32 %v317_v37, %v293_v36 }
  0xb4   : > { %332 = vst.msk [vmem:[%s1105_s29] sm:$0xff] %vm331_vm1, %v327_v38  ;;  %v297_v44 = vpop.f32.mrf.mxu1 }
  0xb6   : > { %769 = vmatmul.msk.bf16.gmra.mxu3 %vm251_vm0, %v486_v33 }
  0xb8   : > { %v272_v45 = vpop.f32.mrf.mxu0  ;;  %v353_v58 = vpop.f32.mrf.mxu3 }
  0xb9   : > { %v319_v42 = vpop.f32.mrf.mxu2  ;;  %v298_v46 = vadd.f32 %v297_v44, %v272_v45 }
  0xba   : > { %v328_v43 = vadd.f32 %v319_v42, %v295_v41 }
  0xbc   : > { %333 = vst.msk [vmem:[%s1105_s29 + $0x20] sm:$0xff] %vm331_vm1, %v328_v43  ;;  %v299_v50 = vpop.f32.mrf.mxu1 }
  0xbe   : > { %778 = vmatmul.msk.bf16.vlgmr.msra.gmra.mxu2 %vm251_vm0, %v484_v31 }
  0xc0   : > { %v274_v51 = vpop.f32.mrf.mxu0  ;;  %v356_v0 = vpop.f32.mrf.mxu3 }
  0xc1   : > { %v322_v47 = vpop.f32.mrf.mxu2  ;;  %v300_v52 = vadd.f32 %v299_v50, %v274_v51 }
  0xc2   : > { %v329_v48 = vadd.f32 %v322_v47, %v298_v46 }
  0xc4   : > { %334 = vst.msk [vmem:[%s1105_s29 + $0x40] sm:$0xff] %vm331_vm1, %v329_v48  ;;  %v389_v55 = vpop.f32.mrf.mxu1 }
  0xc6   : > { %780 = vmatmul.msk.bf16.vlgmr.msra.gmra.mxu3 %vm251_vm0, %v515_v28 }
  0xc8   : > { %v370_v56 = vpop.f32.mrf.mxu0  ;;  %v358_v5 = vpop.f32.mrf.mxu3 }
  0xc9   : > { %v324_v53 = vpop.f32.mrf.mxu2  ;;  %v371_v57 = vadd.f32 %v370_v56, %v351_v49 }
  0xca   : > { %v330_v54 = vadd.f32 %v324_v53, %v300_v52 }
  0xcb   : > { %v399_v59 = vadd.f32 %v389_v55, %v371_v57 }
  0xcc   : > { %335 = vst.msk [vmem:[%s1105_s29 + $0x60] sm:$0xff] %vm331_vm1, %v330_v54  ;;  %v391_v60 = vpop.f32.mrf.mxu1 }
  0xcd   : > { %762 = vst.msk [vmem:[%s1105_s29 + $0x8] sm:$0xff] %vm331_vm1, %v399_v59 }
  0xce   : > { %779 = vmatmul.msk.bf16.gmra.mxu2 %vm251_vm0, %v486_v33 }
  0xd0   : > { %v372_v61 = vpop.f32.mrf.mxu0 }
  0xd1   : > { %v373_v62 = vadd.f32 %v372_v61, %v353_v58 }
  0xd3   : > { %v400_v63 = vadd.f32 %v391_v60, %v373_v62 }
  0xd4   : > { %v394_v1 = vpop.f32.mrf.mxu1 }
  0xd5   : > { %763 = vst.msk [vmem:[%s1105_s29 + $0x28] sm:$0xff] %vm331_vm1, %v400_v63 }
  0xd6   : > { %781 = vmatmul.msk.bf16.gmra.mxu3 %vm251_vm0, %v517_v29 }
  0xd8   : > { %v375_v2 = vpop.f32.mrf.mxu0 }
  0xd9   : > { %v376_v3 = vadd.f32 %v375_v2, %v356_v0 }
  0xdb   : > { %v401_v4 = vadd.f32 %v394_v1, %v376_v3 }
  0xdc   : > { %v396_v8 = vpop.f32.mrf.mxu1 }
  0xdd   : > { %764 = vst.msk [vmem:[%s1105_s29 + $0x48] sm:$0xff] %vm331_vm1, %v401_v4 }
  0xe0   : > { %v377_v6 = vpop.f32.mrf.mxu0 }
  0xe1   : > { %v378_v7 = vadd.f32 %v377_v6, %v358_v5 }
  0xe3   : > { %v402_v9 = vadd.f32 %v396_v8, %v378_v7 }
  0xe5   : > { %765 = vst.msk [vmem:[%s1105_s29 + $0x68] sm:$0xff] %vm331_vm1, %v402_v9 }
 0x105   : > { %v533_v11 = vpop.f32.mrf.mxu0 }
 0x10d   : > { %v535_v16 = vpop.f32.mrf.mxu0 }
 0x115   : > { %v538_v21 = vpop.f32.mrf.mxu0 }
 0x11b   : > { %v561_v26 = vpop.f32.mrf.mxu1 }
 0x11d   : > { %v540_v27 = vpop.f32.mrf.mxu0 }
 0x121   : > { %v471_v10 = vpop.f32.mrf.mxu2 }
 0x123   : > { %v563_v36 = vpop.f32.mrf.mxu1 }
 0x129   : > { %v473_v12 = vpop.f32.mrf.mxu2  ;;  %v502_v13 = vpop.f32.mrf.mxu3 }
 0x12a   : > { %v503_v14 = vadd.f32 %v502_v13, %v471_v10 }
 0x12b   : > { %v566_v41 = vpop.f32.mrf.mxu1 }
 0x12c   : > { %v543_v15 = vadd.f32 %v533_v11, %v503_v14 }
 0x12e   : > { %772 = vst.msk [vmem:[%s1105_s29 + $0x10] sm:$0xff] %vm331_vm1, %v543_v15 }
 0x131   : > { %v476_v17 = vpop.f32.mrf.mxu2  ;;  %v504_v18 = vpop.f32.mrf.mxu3 }
 0x132   : > { %v505_v19 = vadd.f32 %v504_v18, %v473_v12 }
 0x133   : > { %v568_v46 = vpop.f32.mrf.mxu1 }
 0x134   : > { %v544_v20 = vadd.f32 %v535_v16, %v505_v19 }
 0x136   : > { %773 = vst.msk [vmem:[%s1105_s29 + $0x30] sm:$0xff] %vm331_vm1, %v544_v20 }
 0x139   : > { %v478_v22 = vpop.f32.mrf.mxu2  ;;  %v507_v23 = vpop.f32.mrf.mxu3 }
 0x13a   : > { %v508_v24 = vadd.f32 %v507_v23, %v476_v17 }
 0x13c   : > { %v545_v25 = vadd.f32 %v538_v21, %v508_v24 }
 0x13e   : > { %774 = vst.msk [vmem:[%s1105_s29 + $0x50] sm:$0xff] %vm331_vm1, %v545_v25 }
 0x141   : > { %v509_v28 = vpop.f32.mrf.mxu3  ;;  %v580_v29 = vpop.f32.mrf.mxu2 }
 0x142   : > { %v510_v30 = vadd.f32 %v509_v28, %v478_v22  ;;  %v581_v32 = vadd.f32 %v580_v29, %v561_v26 }
 0x144   : > { %v546_v31 = vadd.f32 %v540_v27, %v510_v30 }
 0x146   : > { %775 = vst.msk [vmem:[%s1105_s29 + $0x70] sm:$0xff] %vm331_vm1, %v546_v31 }
 0x149   : > { %v582_v33 = vpop.f32.mrf.mxu2  ;;  %v599_v34 = vpop.f32.mrf.mxu3 }
 0x14a   : > { %v609_v35 = vadd.f32 %v599_v34, %v581_v32  ;;  %v583_v37 = vadd.f32 %v582_v33, %v563_v36 }
 0x14c   : > { %782 = vst.msk [vmem:[%s1105_s29 + $0x18] sm:$0xff] %vm331_vm1, %v609_v35 }
 0x151   : > { %v601_v38 = vpop.f32.mrf.mxu3  ;;  %v585_v40 = vpop.f32.mrf.mxu2 }
 0x152   : > { %v610_v39 = vadd.f32 %v601_v38, %v583_v37  ;;  %v586_v42 = vadd.f32 %v585_v40, %v566_v41 }
 0x154   : > { %783 = vst.msk [vmem:[%s1105_s29 + $0x38] sm:$0xff] %vm331_vm1, %v610_v39 }
 0x159   : > { %v604_v43 = vpop.f32.mrf.mxu3  ;;  %v587_v45 = vpop.f32.mrf.mxu2 }
 0x15a   : > { %v611_v44 = vadd.f32 %v604_v43, %v586_v42  ;;  %v588_v47 = vadd.f32 %v587_v45, %v568_v46 }
 0x15c   : > { %784 = vst.msk [vmem:[%s1105_s29 + $0x58] sm:$0xff] %vm331_vm1, %v611_v44 }
 0x161   : > { %v606_v48 = vpop.f32.mrf.mxu3 }
 0x162   : > { %v612_v49 = vadd.f32 %v606_v48, %v588_v47 }
 0x164   : > { %785 = vst.msk [vmem:[%s1105_s29 + $0x78] sm:$0xff] %vm331_vm1, %v612_v49 }
 0x165   : > { %919 = shalt.err (!%p916_p13)
}
 0x166   : > { %s979_s15 = smov 128   ;;  %s980_s27 = smov 8  }
 0x167   : > { %797 = dma.vmem_to_hbm [thread:$0]  (%p1047_p9), %s636_s6, 2048, %s638_s7, %s619_s12, %s979_s15, %s979_s15, %s980_s27  }
 0x168 PF: > { %s652_s21 = sand.u32 1, %s954_s9   ;;  %p804_p0 = pnand %p733_p12, %p1054_p11 }
 0x169   : > { %s653_s28 = scalar_lea.sflag [#allocation4], %s652_s21 }
 0x16a   : > { %p805_p1 = pneg %p804_p0 }
 0x16c   : > { %949 = dma.done.wait (%p805_p1), %s653_s28, 2048  }
 0x16d   : > { %951 = vsyncadd (%p805_p1), %s653_s28, 4294965248  ;;  %s18_s14 = sadd.s32 1, %s974_s14   ;;  %s1189_s9 = smov %s958_s10 }
 0x16e   : > { %p15_p2 = scmp.ge.s32.totalorder %s18_s14, 4   ;;  %s1190_s10 = smov %s962_s11 }
 0x16f   : > { %s1191_s11 = smov %s1052_s23  ;;  %s1192_s12 = smov %s970_s13 }
 0x170   : > { %s1193_s13 = smov %s1195_s17  ;;  %17 = sbr.rel (!%p15_p2) target bundleno = 6 (0x6), region = 77 }
 0x175   :  { %659 = vsyncpa [#allocation3], 1 }
 0x176   :  { %661 = vsyncpa [#allocation3 + $0x1], 1 }
 0x177   :  { %662 = vsyncpa [#allocation4], 1 }
 0x178   :  { %664 = vsyncpa [#allocation4 + $0x1], 1 }

</bundles_post_ra>
